<compile_context>
chip_gen: v5e
topology: v5e:2x2
jax: 0.10.0
libtpu: 0.0.40
codegen_flags: <defaults>
</compile_context>

<pallas_src>
import functools

import jax
import jax.numpy as jnp
from jax import lax
from jax.experimental import pallas as pl
from jax.experimental.pallas import tpu as pltpu

_LANES = 128
_BLOCK_ROWS = 2048  # (2048, 128) f32 block = 1 MiB/buffer -> fits scoped VMEM on v5e/v6e/v7x


def _i32(v):
    """Wrap an unsigned 32-bit constant into a Python int representable as int32."""
    v &= 0xFFFFFFFF
    return v - (1 << 32) if v >= (1 << 31) else v


_GOLDEN = _i32(0x9E3779B9)
_MIX1 = _i32(0x7FEB352D)
_MIX2 = _i32(0x846CA68B)


def _shr(h, n):
    # logical (zero-fill) right shift on int32
    return lax.shift_right_logical(h, jnp.int32(n))


def _hash32(h):
    """lowbias32 finalizer: decorrelates sequential counters. int32 wrapping math."""
    h = h ^ _shr(h, 16)
    h = h * jnp.int32(_MIX1)
    h = h ^ _shr(h, 15)
    h = h * jnp.int32(_MIX2)
    h = h ^ _shr(h, 16)
    return h


def _dropout_kernel(seed_ref, x_ref, o_ref, *, threshold24, scale):
    """Elementwise dropout on a (TR, 128) tile with a per-element counter hash."""
    tr, lanes = x_ref.shape
    pid = pl.program_id(0)

    row = lax.broadcasted_iota(jnp.int32, (tr, lanes), 0)
    col = lax.broadcasted_iota(jnp.int32, (tr, lanes), 1)
    # Global element index of every lane in this block (unique per grid step).
    idx = (pid * tr + row) * lanes + col

    h = _hash32(idx + seed_ref[0] * jnp.int32(_GOLDEN))
    u24 = _shr(h, 8)                     # uniform integer in [0, 2^24)
    keep = u24 < threshold24             # P(keep) == survival rate p

    xv = x_ref[...]
    o_ref[...] = jnp.where(keep, xv * scale, 0.0).astype(o_ref.dtype)


def _compiler_params():
    try:
        return pltpu.CompilerParams(dimension_semantics=("parallel",))
    except (AttributeError, TypeError):
        return None


def dropout(inputs, p, training, seed=0):
    """Pallas TPU version of stochastic_depth.dropout (p = survival/keep rate)."""
    assert 0.0 <= p <= 1.0, f"p should be in the range of [0, 1] but found {p}"
    if p == 0.0 or not training:
        return inputs
    if p >= 1.0:
        # mask is all ones divided by 1.0 -> identity
        return inputs

    orig_shape = inputs.shape
    orig_dtype = inputs.dtype
    n = inputs.size

    flat = jnp.ravel(inputs)
    rem = n % _LANES
    if rem:
        # Rare ragged tail: pad to a lane multiple (extra copy only in this case).
        flat = jnp.pad(flat, (0, _LANES - rem))
    rows = flat.size // _LANES
    x2d = flat.reshape(rows, _LANES)

    # Row tile: multiple of 8 sublanes, capped at ~1 MiB f32 blocks.
    tr = min(_BLOCK_ROWS, ((rows + 7) // 8) * 8)
    num_blocks = pl.cdiv(rows, tr)

    threshold24 = min(int(round(p * (1 << 24))), 1 << 24)
    scale = 1.0 / p
    seed_arr = jnp.asarray([seed], dtype=jnp.int32)

    out2d = pl.pallas_call(
        functools.partial(_dropout_kernel, threshold24=threshold24, scale=scale),
        out_shape=jax.ShapeDtypeStruct((rows, _LANES), orig_dtype),
        grid=(num_blocks,),
        in_specs=[
            pl.BlockSpec(memory_space=pltpu.SMEM),            # seed scalar
            pl.BlockSpec((tr, _LANES), lambda i: (i, 0)),     # input tile
        ],
        out_specs=pl.BlockSpec((tr, _LANES), lambda i: (i, 0)),
        compiler_params=_compiler_params(),
    )(seed_arr, x2d)

    if rem:
        return out2d.reshape(-1)[:n].reshape(orig_shape)
    return out2d.reshape(orig_shape)


class Dropout:
    """Mirror of the PyTorch Dropout module (stochastic_depth.py)."""

    def __init__(self, p):
        self.p = p
        self.training = True

    def __call__(self, inputs, seed=0):
        return dropout(inputs, self.p, self.training, seed=seed)


if __name__ == "__main__":
    key = jax.random.PRNGKey(0)
    x = jax.random.normal(key, (2, 4, 16, 16), dtype=jnp.float32)  # NCHW

    p = 0.8  # survival (keep) rate
    mod = Dropout(p=p)
    mod.training = True
    y = mod(x, seed=0)
    jax.block_until_ready(y)

    ok_shape = (y.shape == x.shape) and (y.dtype == x.dtype)

    # Every output element must be either 0 or x / p.
    scaled = x * (1.0 / p)
    is_zero = (y == 0)
    is_kept = jnp.isclose(y, scaled, rtol=1e-5, atol=1e-6)
    ok_vals = bool(jnp.all(is_zero | is_kept))

    # Statistical sanity: some elements dropped, some kept, fraction near p.
    keep_frac = float(1.0 - jnp.mean(is_zero.astype(jnp.float32)))
    ok_stats = 0.5 < keep_frac < 0.95

    # Eval mode is identity.
    mod.training = False
    y_eval = mod(x, seed=0)
    jax.block_until_ready(y_eval)
    ok_eval = bool(jnp.array_equal(y_eval, x))

    if ok_shape and ok_vals and ok_stats and ok_eval:
        print("KERNEL_OK")
    else:
        print(f"FAIL shape={ok_shape} vals={ok_vals} stats={ok_stats} "
              f"(keep_frac={keep_frac:.3f}) eval={ok_eval}")
</pallas_src>

<mosaic_0001>
module attributes {stable_mosaic.version = 11 : i64} {
  func.func @_dropout_kernel(%arg0: i32, %arg1: memref<1xi32, #tpu.memory_space<smem>>, %arg2: memref<16x128xf32, #tpu.memory_space<vmem>>, %arg3: memref<16x128xf32, #tpu.memory_space<vmem>>) attributes {dimension_semantics = [#tpu.dimension_semantics<parallel>], iteration_bounds = array<i64: 1>, scalar_prefetch = 0 : i64, scratch_operands = 0 : i64, tpu.core_type = #tpu.core_type<tc>, window_params = [{transform_indices = @transform_0, window_bounds = array<i64: 1>}, {transform_indices = @transform_1, window_bounds = array<i64: 16, 128>}, {transform_indices = @transform_2, window_bounds = array<i64: 16, 128>}]} {
    %0 = tpu.iota {dimensions = array<i32: 0>} : vector<16x128xi32>
    %1 = tpu.iota {dimensions = array<i32: 1>} : vector<16x128xi32>
    %c16_i32 = arith.constant 16 : i32
    %2 = arith.muli %arg0, %c16_i32 : i32
    %3 = vector.broadcast %2 : i32 to vector<16x128xi32>
    %4 = arith.addi %3, %0 : vector<16x128xi32>
    %c128_i32 = arith.constant 128 : i32
    %5 = vector.broadcast %c128_i32 : i32 to vector<16x128xi32>
    %6 = arith.muli %4, %5 : vector<16x128xi32>
    %7 = arith.addi %6, %1 : vector<16x128xi32>
    %c0 = arith.constant 0 : index
    %8 = memref.load %arg1[%c0] : memref<1xi32, #tpu.memory_space<smem>>
    %c-1640531527_i32 = arith.constant -1640531527 : i32
    %9 = arith.muli %8, %c-1640531527_i32 : i32
    %10 = vector.broadcast %9 : i32 to vector<16x128xi32>
    %11 = arith.addi %7, %10 : vector<16x128xi32>
    %c16_i32_0 = arith.constant 16 : i32
    %12 = vector.broadcast %c16_i32_0 : i32 to vector<16x128xi32>
    %13 = arith.shrui %11, %12 : vector<16x128xi32>
    %14 = arith.xori %11, %13 : vector<16x128xi32>
    %c2146121005_i32 = arith.constant 2146121005 : i32
    %15 = vector.broadcast %c2146121005_i32 : i32 to vector<16x128xi32>
    %16 = arith.muli %14, %15 : vector<16x128xi32>
    %c15_i32 = arith.constant 15 : i32
    %17 = vector.broadcast %c15_i32 : i32 to vector<16x128xi32>
    %18 = arith.shrui %16, %17 : vector<16x128xi32>
    %19 = arith.xori %16, %18 : vector<16x128xi32>
    %c-2073254261_i32 = arith.constant -2073254261 : i32
    %20 = vector.broadcast %c-2073254261_i32 : i32 to vector<16x128xi32>
    %21 = arith.muli %19, %20 : vector<16x128xi32>
    %c16_i32_1 = arith.constant 16 : i32
    %22 = vector.broadcast %c16_i32_1 : i32 to vector<16x128xi32>
    %23 = arith.shrui %21, %22 : vector<16x128xi32>
    %24 = arith.xori %21, %23 : vector<16x128xi32>
    %c8_i32 = arith.constant 8 : i32
    %25 = vector.broadcast %c8_i32 : i32 to vector<16x128xi32>
    %26 = arith.shrui %24, %25 : vector<16x128xi32>
    %c13421773_i32 = arith.constant 13421773 : i32
    %27 = vector.broadcast %c13421773_i32 : i32 to vector<16x128xi32>
    %28 = arith.cmpi slt, %26, %27 : vector<16x128xi32>
    %c0_2 = arith.constant 0 : index
    %c0_3 = arith.constant 0 : index
    %29 = vector.load %arg2[%c0_2, %c0_3] : memref<16x128xf32, #tpu.memory_space<vmem>>, vector<16x128xf32>
    %cst = arith.constant 1.250000e+00 : f32
    %30 = vector.broadcast %cst : f32 to vector<16x128xf32>
    %31 = arith.mulf %29, %30 : vector<16x128xf32>
    %cst_4 = arith.constant 0.000000e+00 : f32
    %32 = vector.broadcast %cst_4 : f32 to vector<16x128xf32>
    %33 = arith.select %28, %31, %32 : vector<16x128xi1>, vector<16x128xf32>
    %c0_5 = arith.constant 0 : index
    %c0_6 = arith.constant 0 : index
    %34 = vector.load %arg3[%c0_5, %c0_6] : memref<16x128xf32, #tpu.memory_space<vmem>>, vector<16x128xf32>
    tpu.vector_store %arg3[%c0_5, %c0_6], %33 {strides = array<i32>} : memref<16x128xf32, #tpu.memory_space<vmem>>, vector<16x128xf32>,
    return
  }
  func.func @transform_0(%arg0: i32) -> i32 {
    %c0_i32 = arith.constant 0 : i32
    %c0_i32_0 = arith.constant 0 : i32
    return %c0_i32 : i32
  }
  func.func @transform_1(%arg0: i32) -> (i32, i32) {
    %c0_i32 = arith.constant 0 : i32
    %c0_i32_0 = arith.constant 0 : i32
    return %arg0, %c0_i32 : i32, i32
  }
  func.func @transform_2(%arg0: i32) -> (i32, i32) {
    %c0_i32 = arith.constant 0 : i32
    %c0_i32_0 = arith.constant 0 : i32
    return %arg0, %c0_i32 : i32, i32
  }
}

</mosaic_0001>

<bundles_post_ra>
// kernel: tpu_custom_call.1
= control target key start
LH: loop header
LB: loop body
LE: loop exit
PB: predicated region body
PF: predicated region fallthrough
CT: control target
= control target key end

     0   :  { %8 = vsyncpa [#allocation4], 0  ;;  %s184_s0 = inlined_call_operand.<no memory space> [shape: s32[1], index: 0, kind: input, shape index: {}]   ;;  %s185_s1 = inlined_call_operand.hbm [shape: f32[16,128], index: 1, kind: input, shape index: {}]   ;;  %s186_s2 = inlined_call_operand.hbm [shape: f32[16,128], index: 2, kind: output, shape index: {}]  }
   0x1   :  { %9 = vsyncpa [#allocation5], 0  ;;  %s16_s11 = sshll.u32 %s185_s1, 4  ;;  %s150_s12 = smov [#allocation3]   ;;  %s17_s11 = int_to_ptr.hbm [resolvable:$true] %s16_s11 }
   0x2   :  { %s18_s13 = sshll.u32 %s150_s12, 4  ;;  %s151_s14 = smov 128   ;;  %s19_s13 = int_to_ptr.vmem [resolvable:$true] %s18_s13 }
   0x3   :  { %s152_s15 = smov 8  }
   0x4   :  { %24 = dma.hbm_to_vmem [thread:$0]  %s17_s11, 256, %s19_s13, [#allocation4], %s151_s14, %s151_s14, %s152_s15  }
   0x5   :  { %146 = dma.done.wait [#allocation4], 256  }
   0x6   :  { %147 = vsyncadd [#allocation4], 4294967040  ;;  %v29_v0 = vlaneseq  ;;  %s43_s18 = smul.u32 2654435769, %s184_s0  ;;  %v67_v23 = vld [vmem:[#allocation3] sm:$0xff]  ;;  %v68_v27 = vld [vmem:[#allocation3 + $0x8] sm:$0xff] }
   0x7   :  { %v69_v28 = vmul.f32 1.25, %v67_v23  ;;  %v70_v31 = vmul.f32 1.25, %v68_v27  ;;  %s153_s0 = smov [#allocation6]   ;;  %s81_s21 = sshll.u32 %s186_s2, 4  ;;  %s82_s21 = int_to_ptr.hbm [resolvable:$true] %s81_s21 }
   0x8   :  { %v30_v1 = vshrl.u32 %v29_v0, 7  ;;  %v33_v2 = vand.u32 127, %v29_v0  ;;  %v44_v5 = vstv %s43_s18  ;;  %s79_s1 = sshll.u32 %s153_s0, 4  ;;  %s80_s1 = int_to_ptr.vmem [resolvable:$true] %s79_s1 }
   0xa   :  { %v38_v3 = vmul.u32 128, %v30_v1  ;;  %v31_v4 = vadd.s32 8, %v30_v1 }
   0xc   :  { %v40_v6 = vadd.s32 %v38_v3, %v33_v2  ;;  %v39_v7 = vmul.u32 128, %v31_v4 }
   0xe   :  { %v45_v8 = vadd.s32 %v44_v5, %v40_v6  ;;  %v41_v9 = vadd.s32 %v39_v7, %v33_v2 }
  0x10   :  { %v47_v10 = vshrl.u32 %v45_v8, 16  ;;  %v46_v11 = vadd.s32 %v44_v5, %v41_v9 }
  0x12   :  { %v49_v12 = vxor.u32 %v47_v10, %v45_v8  ;;  %v48_v13 = vshrl.u32 %v46_v11, 16 }
  0x14   :  { %v51_v14 = vmul.u32 2146121005, %v49_v12  ;;  %v50_v15 = vxor.u32 %v48_v13, %v46_v11 }
  0x16   :  { %v53_v16 = vshrl.u32 %v51_v14, 15  ;;  %v52_v17 = vmul.u32 2146121005, %v50_v15 }
  0x18   :  { %v55_v18 = vxor.u32 %v53_v16, %v51_v14  ;;  %v54_v19 = vshrl.u32 %v52_v17, 15 }
  0x1a   :  { %v57_v20 = vmul.u32 2221713035, %v55_v18  ;;  %v56_v21 = vxor.u32 %v54_v19, %v52_v17 }
  0x1c   :  { %v59_v22 = vshrl.u32 %v57_v20, 16  ;;  %v58_v24 = vmul.u32 2221713035, %v56_v21 }
  0x1e   :  { %v61_v25 = vxor.u32 %v59_v22, %v57_v20  ;;  %v60_v26 = vshrl.u32 %v58_v24, 16 }
  0x20   :  { %v63_v29 = vshrl.u32 %v61_v25, 8  ;;  %v62_v30 = vxor.u32 %v60_v26, %v58_v24 }
  0x22   :  { %vm65_vm0 = vcmp.lt.s32.totalorder %v63_v29, 13421773  ;;  %v64_v32 = vshrl.u32 %v62_v30, 8 }
  0x23   :  { %v71_v33 = vsel %vm65_vm0, %v69_v28, 0.0 }
  0x24   :  { %73 = vst [vmem:[#allocation6] sm:$0xff] %v71_v33  ;;  %vm66_vm1 = vcmp.lt.s32.totalorder %v64_v32, 13421773 }
  0x25   :  { %v72_v34 = vsel %vm66_vm1, %v70_v31, 0.0 }
  0x26   :  { %74 = vst [vmem:[#allocation6 + $0x8] sm:$0xff] %v72_v34 }
  0x27   :  { %87 = dma.vmem_to_hbm [thread:$0]  %s80_s1, 256, %s82_s21, [#allocation5], %s151_s14, %s151_s14, %s152_s15  }
  0x28   :  { %148 = dma.done.wait [#allocation5], 256  }
  0x29   :  { %149 = vsyncadd [#allocation5], 4294967040 }
  0x2a   :  { %92 = vsyncpa [#allocation4], 1 }
  0x2b   :  { %93 = vsyncpa [#allocation5], 1 }

</bundles_post_ra>
